<compile_context>
chip_gen: v6e
topology: v6e:2x2x1
jax: 0.10.0
libtpu: 0.0.40
codegen_flags: <defaults>
</compile_context>

<pallas_src>
import functools

import jax
import jax.numpy as jnp
from jax.experimental import pallas as pl
from jax.experimental.pallas import tpu as pltpu


def _image_proj_kernel(x_ref, w_ref, b_ref, g_ref, beta_ref, o_ref, acc_ref, *, eps):
    # x_ref:    (B, block_k)            -- activation slice for this K tile
    # w_ref:    (block_k, cross_dim)    -- weight tile (token t, K tile k)
    # b_ref:    (1, cross_dim)          -- projection bias slice for this token
    # g_ref:    (1, cross_dim)          -- LayerNorm gamma
    # beta_ref: (1, cross_dim)          -- LayerNorm beta
    # o_ref:    (B, cross_dim)          -- lane-dense output slice for this token
    # acc_ref:  (B, cross_dim) f32      -- persistent accumulator
    k = pl.program_id(1)

    @pl.when(k == 0)
    def _():
        acc_ref[...] = jnp.broadcast_to(
            b_ref[...].astype(jnp.float32), acc_ref.shape)

    acc_ref[...] += jnp.dot(x_ref[...], w_ref[...],
                            preferred_element_type=jnp.float32)

    @pl.when(k == pl.num_programs(1) - 1)
    def _():
        y = acc_ref[...]
        # LayerNorm over the lane axis (one full cross_dim group per token tile).
        mean = jnp.mean(y, axis=-1, keepdims=True)
        centered = y - mean
        var = jnp.mean(centered * centered, axis=-1, keepdims=True)
        inv = jax.lax.rsqrt(var + eps)
        normed = centered * inv
        normed = (normed * g_ref[...].astype(jnp.float32)
                  + beta_ref[...].astype(jnp.float32))
        o_ref[...] = normed.astype(o_ref.dtype)


def _pick_block_k(clip_dim):
    """Contraction-tile size: multiple of 128 that divides clip_dim, capped at 512."""
    if clip_dim <= 512:
        return clip_dim
    for bk in (512, 384, 256, 128):
        if clip_dim % bk == 0:
            return bk
    return clip_dim  # fall back to full-K (single step)


def image_proj_model(image_embeds, w, b, gamma, beta, *, tokens, cross_dim,
                     eps=1e-5, compute_dtype=None):
    """image_embeds: (B, clip_dim); w: (clip_dim, tokens*cross_dim) (pre-transposed
    vs torch); b: (tokens*cross_dim,); gamma/beta: (cross_dim,).
    compute_dtype: optional dtype (e.g. jnp.bfloat16) for streaming x / w; the
    matmul always accumulates in f32. Returns (B, tokens, cross_dim)."""
    B, clip_dim = image_embeds.shape
    out_features = tokens * cross_dim
    assert w.shape == (clip_dim, out_features)
    out_dtype = image_embeds.dtype

    # Cast the HBM-heavy operands at the call site (halves weight DMA bytes when
    # compute_dtype=bf16); bias / LN params stay f32 (tiny).
    if compute_dtype is not None:
        x = image_embeds.astype(compute_dtype)
        w = w.astype(compute_dtype)
    else:
        x = image_embeds

    b2 = b.reshape(1, out_features)
    g2 = gamma.reshape(1, cross_dim)
    be2 = beta.reshape(1, cross_dim)

    block_k = _pick_block_k(clip_dim)
    n_k = clip_dim // block_k

    kernel = functools.partial(_image_proj_kernel, eps=eps)

    itemsize = lambda a: jnp.dtype(a.dtype).itemsize
    cost = pl.CostEstimate(
        flops=2 * B * clip_dim * out_features,
        transcendentals=B * tokens,  # one rsqrt per (row, token)
        bytes_accessed=(x.size * itemsize(x) + w.size * itemsize(w)
                        + b2.size * itemsize(b2) + g2.size * itemsize(g2)
                        + be2.size * itemsize(be2)
                        + B * out_features * jnp.dtype(out_dtype).itemsize),
    )

    out2d = pl.pallas_call(
        kernel,
        out_shape=jax.ShapeDtypeStruct((B, out_features), out_dtype),
        grid_spec=pltpu.PrefetchScalarGridSpec(
            num_scalar_prefetch=0,
            grid=(tokens, n_k),
            in_specs=[
                pl.BlockSpec((B, block_k), lambda t, k: (0, k)),          # x K-slice
                pl.BlockSpec((block_k, cross_dim), lambda t, k: (k, t)),  # weight tile
                pl.BlockSpec((1, cross_dim), lambda t, k: (0, t)),        # bias slice
                pl.BlockSpec((1, cross_dim), lambda t, k: (0, 0)),        # gamma
                pl.BlockSpec((1, cross_dim), lambda t, k: (0, 0)),        # beta
            ],
            out_specs=pl.BlockSpec((B, cross_dim), lambda t, k: (0, t)),  # lane-dense output
            scratch_shapes=[pltpu.VMEM((B, cross_dim), jnp.float32)],     # accumulator
        ),
        compiler_params=pltpu.CompilerParams(
            dimension_semantics=("parallel", "arbitrary")),
        cost_estimate=cost,
    )(x, w, b2, g2, be2)

    # Free layout plumbing in the wrapper (keeps the kernel store lane-dense).
    return out2d.reshape(B, tokens, cross_dim)


def _reference(image_embeds, w, b, gamma, beta, *, tokens, cross_dim, eps=1e-5):
    y = image_embeds @ w + b
    y = y.reshape(-1, tokens, cross_dim)
    mean = jnp.mean(y, axis=-1, keepdims=True)
    var = jnp.mean((y - mean) ** 2, axis=-1, keepdims=True)
    return (y - mean) * jax.lax.rsqrt(var + eps) * gamma + beta


if __name__ == "__main__":
    # Small, module-consistent shapes.
    B = 2
    clip_embeddings_dim = 256
    cross_attention_dim = 128
    clip_extra_context_tokens = 4
    out_features = clip_extra_context_tokens * cross_attention_dim

    key = jax.random.PRNGKey(0)
    k_x, k_w, k_b = jax.random.split(key, 3)

    image_embeds = jax.random.normal(k_x, (B, clip_embeddings_dim), dtype=jnp.float32)

    # Deterministic synthetic parameters (Linear weight pre-transposed to (in, out)).
    bound = 1.0 / (clip_embeddings_dim ** 0.5)
    w = jax.random.uniform(
        k_w, (clip_embeddings_dim, out_features), dtype=jnp.float32, minval=-bound, maxval=bound
    )
    b = jax.random.uniform(
        k_b, (out_features,), dtype=jnp.float32, minval=-bound, maxval=bound
    )
    # LayerNorm default init (weight=1, bias=0), as in torch.nn.LayerNorm.
    gamma = jnp.ones((cross_attention_dim,), dtype=jnp.float32)
    beta = jnp.zeros((cross_attention_dim,), dtype=jnp.float32)

    ref = _reference(
        image_embeds, w, b, gamma, beta,
        tokens=clip_extra_context_tokens, cross_dim=cross_attention_dim,
    )

    # f32 path: tight tolerance vs the pure-JAX reference.
    out_f32 = image_proj_model(
        image_embeds, w, b, gamma, beta,
        tokens=clip_extra_context_tokens, cross_dim=cross_attention_dim,
    )
    out_f32 = jax.block_until_ready(out_f32)
    assert out_f32.shape == (B, clip_extra_context_tokens, cross_attention_dim)
    assert jnp.allclose(out_f32, ref, atol=1e-4, rtol=1e-4), "f32 mismatch vs JAX reference"

    # bf16-streamed path (weight-HBM-bound optimization): f32 accumulation, looser tolerance.
    out_bf16 = image_proj_model(
        image_embeds, w, b, gamma, beta,
        tokens=clip_extra_context_tokens, cross_dim=cross_attention_dim,
        compute_dtype=jnp.bfloat16,
    )
    out_bf16 = jax.block_until_ready(out_bf16)
    assert out_bf16.shape == (B, clip_extra_context_tokens, cross_attention_dim)
    assert jnp.allclose(out_bf16, ref, atol=1e-1, rtol=1e-1), "bf16 mismatch vs JAX reference"

    print("KERNEL_OK")
</pallas_src>

<mosaic_0001>
module attributes {stable_mosaic.version = 11 : i64} {
  func.func @_image_proj_kernel(%arg0: i32, %arg1: i32, %arg2: memref<2x256xf32, #tpu.memory_space<vmem>>, %arg3: memref<256x128xf32, #tpu.memory_space<vmem>>, %arg4: memref<1x128xf32, #tpu.memory_space<vmem>>, %arg5: memref<1x128xf32, #tpu.memory_space<vmem>>, %arg6: memref<1x128xf32, #tpu.memory_space<vmem>>, %arg7: memref<2x128xf32, #tpu.memory_space<vmem>>, %arg8: memref<2x128xf32, #tpu.memory_space<vmem>>) attributes {dimension_semantics = [#tpu.dimension_semantics<parallel>, #tpu.dimension_semantics<arbitrary>], iteration_bounds = array<i64: 4, 1>, scalar_prefetch = 0 : i64, scratch_operands = 1 : i64, tpu.core_type = #tpu.core_type<tc>, window_params = [{transform_indices = @transform_0, window_bounds = array<i64: 2, 256>}, {transform_indices = @transform_1, window_bounds = array<i64: 256, 128>}, {transform_indices = @transform_2, window_bounds = array<i64: 1, 128>}, {pipeline_mode = #tpu.pipeline_mode<synchronous>, transform_indices = @transform_3, window_bounds = array<i64: 1, 128>}, {pipeline_mode = #tpu.pipeline_mode<synchronous>, transform_indices = @transform_4, window_bounds = array<i64: 1, 128>}, {transform_indices = @transform_5, window_bounds = array<i64: 2, 128>}]} {
    %c0_i32 = arith.constant 0 : i32
    %0 = arith.cmpi eq, %arg1, %c0_i32 : i32
    %1 = arith.extui %0 : i1 to i32
    %c0_i32_0 = arith.constant 0 : i32
    %2 = arith.cmpi ne, %1, %c0_i32_0 : i32
    scf.if %2 {
      %c0_10 = arith.constant 0 : index
      %c0_11 = arith.constant 0 : index
      %12 = vector.load %arg4[%c0_10, %c0_11] : memref<1x128xf32, #tpu.memory_space<vmem>>, vector<1x128xf32>
      %13 = vector.shape_cast %12 : vector<1x128xf32> to vector<1x128xf32>
      %14 = vector.broadcast %13 : vector<1x128xf32> to vector<2x128xf32>
      %c0_12 = arith.constant 0 : index
      %c0_13 = arith.constant 0 : index
      %15 = vector.load %arg8[%c0_12, %c0_13] : memref<2x128xf32, #tpu.memory_space<vmem>>, vector<2x128xf32>
      tpu.vector_store %arg8[%c0_12, %c0_13], %14 {strides = array<i32>} : memref<2x128xf32, #tpu.memory_space<vmem>>, vector<2x128xf32>,
    } else {
    }
    %c0 = arith.constant 0 : index
    %c0_1 = arith.constant 0 : index
    %3 = vector.load %arg8[%c0, %c0_1] : memref<2x128xf32, #tpu.memory_space<vmem>>, vector<2x128xf32>
    %c0_2 = arith.constant 0 : index
    %c0_3 = arith.constant 0 : index
    %4 = vector.load %arg2[%c0_2, %c0_3] : memref<2x256xf32, #tpu.memory_space<vmem>>, vector<2x256xf32>
    %c0_4 = arith.constant 0 : index
    %c0_5 = arith.constant 0 : index
    %5 = vector.load %arg3[%c0_4, %c0_5] : memref<256x128xf32, #tpu.memory_space<vmem>>, vector<256x128xf32>
    %cst = arith.constant dense<0.000000e+00> : vector<2x128xf32>
    %6 = tpu.matmul %4, %5, %cst {dimension_numbers = #tpu.dot_dimension_numbers<[1], [0], [0], [1], [0, 0, 1, 1], [], []>} : vector<2x256xf32>, vector<256x128xf32>, vector<2x128xf32> -> vector<2x128xf32>
    %7 = arith.addf %3, %6 : vector<2x128xf32>
    %c0_6 = arith.constant 0 : index
    %c0_7 = arith.constant 0 : index
    %8 = vector.load %arg8[%c0_6, %c0_7] : memref<2x128xf32, #tpu.memory_space<vmem>>, vector<2x128xf32>
    tpu.vector_store %arg8[%c0_6, %c0_7], %7 {strides = array<i32>} : memref<2x128xf32, #tpu.memory_space<vmem>>, vector<2x128xf32>,
    %c0_i32_8 = arith.constant 0 : i32
    %9 = arith.cmpi eq, %arg1, %c0_i32_8 : i32
    %10 = arith.extui %9 : i1 to i32
    %c0_i32_9 = arith.constant 0 : i32
    %11 = arith.cmpi ne, %10, %c0_i32_9 : i32
    scf.if %11 {
      %c0_10 = arith.constant 0 : index
      %c0_11 = arith.constant 0 : index
      %12 = vector.load %arg8[%c0_10, %c0_11] : memref<2x128xf32, #tpu.memory_space<vmem>>, vector<2x128xf32>
      %cst_12 = arith.constant dense<0.000000e+00> : vector<2xf32>
      %13 = vector.multi_reduction <add>, %12, %cst_12 [1] : vector<2x128xf32> to vector<2xf32>
      %14 = vector.shape_cast %13 : vector<2xf32> to vector<2x1xf32>
      %cst_13 = arith.constant 1.280000e+02 : f32
      %15 = vector.broadcast %cst_13 : f32 to vector<2x1xf32>
      %16 = arith.divf %14, %15 : vector<2x1xf32>
      %17 = vector.broadcast %16 : vector<2x1xf32> to vector<2x128xf32>
      %18 = arith.subf %12, %17 : vector<2x128xf32>
      %19 = arith.mulf %18, %18 : vector<2x128xf32>
      %cst_14 = arith.constant dense<0.000000e+00> : vector<2xf32>
      %20 = vector.multi_reduction <add>, %19, %cst_14 [1] : vector<2x128xf32> to vector<2xf32>
      %21 = vector.shape_cast %20 : vector<2xf32> to vector<2x1xf32>
      %cst_15 = arith.constant 1.280000e+02 : f32
      %22 = vector.broadcast %cst_15 : f32 to vector<2x1xf32>
      %23 = arith.divf %21, %22 : vector<2x1xf32>
      %cst_16 = arith.constant 9.99999974E-6 : f32
      %24 = vector.broadcast %cst_16 : f32 to vector<2x1xf32>
      %25 = arith.addf %23, %24 : vector<2x1xf32>
      %26 = math.rsqrt %25 : vector<2x1xf32>
      %27 = vector.broadcast %26 : vector<2x1xf32> to vector<2x128xf32>
      %28 = arith.mulf %18, %27 : vector<2x128xf32>
      %c0_17 = arith.constant 0 : index
      %c0_18 = arith.constant 0 : index
      %29 = vector.load %arg5[%c0_17, %c0_18] : memref<1x128xf32, #tpu.memory_space<vmem>>, vector<1x128xf32>
      %30 = vector.broadcast %29 : vector<1x128xf32> to vector<2x128xf32>
      %31 = arith.mulf %28, %30 : vector<2x128xf32>
      %c0_19 = arith.constant 0 : index
      %c0_20 = arith.constant 0 : index
      %32 = vector.load %arg6[%c0_19, %c0_20] : memref<1x128xf32, #tpu.memory_space<vmem>>, vector<1x128xf32>
      %33 = vector.broadcast %32 : vector<1x128xf32> to vector<2x128xf32>
      %34 = arith.addf %31, %33 : vector<2x128xf32>
      %c0_21 = arith.constant 0 : index
      %c0_22 = arith.constant 0 : index
      %35 = vector.load %arg7[%c0_21, %c0_22] : memref<2x128xf32, #tpu.memory_space<vmem>>, vector<2x128xf32>
      tpu.vector_store %arg7[%c0_21, %c0_22], %34 {strides = array<i32>} : memref<2x128xf32, #tpu.memory_space<vmem>>, vector<2x128xf32>,
    } else {
    }
    return
  }
  func.func @transform_0(%arg0: i32, %arg1: i32) -> (i32, i32) {
    %c0_i32 = arith.constant 0 : i32
    %c0_i32_0 = arith.constant 0 : i32
    return %c0_i32, %arg1 : i32, i32
  }
  func.func @transform_1(%arg0: i32, %arg1: i32) -> (i32, i32) {
    %c0_i32 = arith.constant 0 : i32
    return %arg1, %arg0 : i32, i32
  }
  func.func @transform_2(%arg0: i32, %arg1: i32) -> (i32, i32) {
    %c0_i32 = arith.constant 0 : i32
    %c0_i32_0 = arith.constant 0 : i32
    return %c0_i32, %arg0 : i32, i32
  }
  func.func @transform_3(%arg0: i32, %arg1: i32) -> (i32, i32) {
    %c0_i32 = arith.constant 0 : i32
    %c0_i32_0 = arith.constant 0 : i32
    %c0_i32_1 = arith.constant 0 : i32
    return %c0_i32, %c0_i32_0 : i32, i32
  }
  func.func @transform_4(%arg0: i32, %arg1: i32) -> (i32, i32) {
    %c0_i32 = arith.constant 0 : i32
    %c0_i32_0 = arith.constant 0 : i32
    %c0_i32_1 = arith.constant 0 : i32
    return %c0_i32, %c0_i32_0 : i32, i32
  }
  func.func @transform_5(%arg0: i32, %arg1: i32) -> (i32, i32) {
    %c0_i32 = arith.constant 0 : i32
    %c0_i32_0 = arith.constant 0 : i32
    return %c0_i32, %arg0 : i32, i32
  }
}

</mosaic_0001>

<bundles_post_ra>
// kernel: tpu_custom_call.1
= control target key start
LH: loop header
LB: loop body
LE: loop exit
PB: predicated region body
PF: predicated region fallthrough
CT: control target
= control target key end

     0   :  { %s1175_s0 = inlined_call_operand.hbm [shape: f32[2,256], index: 0, kind: input, shape index: {}]   ;;  %s1176_s1 = inlined_call_operand.hbm [shape: f32[256,512], index: 1, kind: input, shape index: {}]   ;;  %s1177_s2 = inlined_call_operand.hbm [shape: f32[1,512], index: 2, kind: input, shape index: {}]   ;;  %s1178_s3 = inlined_call_operand.vmem [shape: f32[1,128], index: 3, kind: input, shape index: {}]   ;;  %s1179_s4 = inlined_call_operand.vmem [shape: f32[1,128], index: 4, kind: input, shape index: {}]   ;;  %s1180_s5 = inlined_call_operand.hbm [shape: f32[2,512], index: 5, kind: output, shape index: {}]  }
   0x1   :  { %1184 = sst [smem:[#allocation13_spill]] %s1176_s1 }
   0x2   :  { %10 = vsyncpa [#allocation4], 0 }
   0x3   :  { %11 = vsyncpa [#allocation7], 0 }
   0x4   :  { %13 = vsyncpa [#allocation7 + $0x1], 0 }
   0x5   :  { %14 = vsyncpa [#allocation5], 0 }
   0x6   :  { %16 = vsyncpa [#allocation5 + $0x1], 0  ;;  %s946_s18 = smov 0   ;;  %s948_s19 = smov 0  }
   0x7   :  { %s950_s20 = smov 0   ;;  %s952_s21 = smov 0  }
   0x8   :  { %s954_s22 = smov 0   ;;  %s956_s23 = smov 0  }
   0x9 LB: > { %s34_s24 = sadd.s32 1, %s903_s22  ;;  %s69_s25 = sadd.s32 1, %s895_s20  ;;  %s907_s23 = sphi %s956_s23, %s22_s23   ;;  %s903_s22 = sphi %s954_s22, %s1201_s22   ;;  %s899_s21 = sphi %s952_s21, %s1200_s21   ;;  %s895_s20 = sphi %s950_s20, %s1199_s20   ;;  %s891_s19 = sphi %s948_s19, %s1198_s19   ;;  %s887_s18 = sphi %s946_s18, %s1197_s18  }
   0xa   : > { %p36_p0 = scmp.ge.s32.totalorder %s34_s24, 4  ;;  %p76_p1 = scmp.ne.s32.totalorder %s895_s20, %s891_s19 }
   0xb   : > { %p77_p2 = scmp.eq.s32.totalorder %s907_s23, 0  ;;  %p684_p4 = scmp.lt.s32.totalorder %s907_s23, 4 }
   0xc   : > { %s1203_s24 = smov (%p36_p0, %s34_s24), 0  ;;  %s220_s27 = sand.u32 1, %s907_s23  }
   0xd   : > { %p78_p3 = por %p77_p2, %p76_p1  ;;  %s65_s26 = ssub.s32 %s903_s22, %s1203_s24 }
   0xe   : > { %p67_p5 = scmp.eq.s32.totalorder %s65_s26, 0  ;;  %s222_s28 = sand.u32 1, %s895_s20  }
   0xf   : > { %s609_s29 = sshll.u32 %s903_s22, 7  ;;  %s608_s6 = sshll.u32 %s222_s28, 8 }
  0x10   : > { %s993_s30 = scalar_select %p67_p5, %s895_s20, %s69_s25  }
  0x11   : > { %s1185_s1 = sld [smem:[#allocation13_spill]]  ;;  %p1000_p6 = pnand %p684_p4, %p78_p3 }
  0x12   : > { %s224_s11 = scalar_lea.vmem [#allocation6], %s608_s6  ;;  %s1004_s13 = scalar_lea.sflag [#allocation7], %s220_s27 }
  0x13   : > { %s233_s12 = sshll.u32 %s224_s11, 4  ;;  %p743_p7 = pneg %p1000_p6  ;;  %s234_s12 = int_to_ptr.vmem [resolvable:$true] %s233_s12 }
  0x14   : > { %s754_s14 = scalar_lea.vmem %s234_s12, 4096  ;;  %s909_s15 = smov [#allocation6]  }
  0x15   : > { %p755_p8 = scmp.ne.s32.totalorder %s234_s12, %s754_s14  ;;  %s759_s16 = sshll.u32 %s909_s15, 4  ;;  %s760_s16 = int_to_ptr.vmem [resolvable:$false] %s759_s16 }
  0x16   : > { %s761_s17 = scalar_lea.vmem %s760_s16, 8192  ;;  %p762_p11 = scmp.lt.s32.totalorder %s234_s12, %s760_s16 }
  0x17   : > { %s232_s9 = scalar_lea.hbm %s1185_s1, %s609_s29  ;;  %p757_p9 = pnand %p755_p8, %p743_p7 }
  0x18   : > { %p763_p12 = scmp.lt.s32.totalorder %s761_s17, %s754_s14 }
  0x19   : > { %p758_p10 = pneg %p757_p9 }
  0x1a   : > { %p764_p13 = por %p763_p12, %p762_p11 }
  0x1c   : > { %p765_p0 = pnand %p764_p13, %p758_p10 }
  0x1e   : > { %768 = shalt.err (!%p765_p0)
}
  0x1f   : > { %s910_s25 = smov 512   ;;  %s911_s26 = smov 128  }
  0x20   : > { %s912_s27 = smov 8   ;;  %s1015_s29 = sadd.s32 4294967295, %s907_s23  }
  0x21   : > { %675 = dma.hbm_to_vmem [thread:$0]  (!%p1000_p6), %s232_s9, 4096, %s234_s12, %s1004_s13, %s910_s25, %s911_s26, %s912_s27  }
  0x22   : > { %s604_s6 = sadd.s32 4294967294, %s907_s23   ;;  %p82_p2 = scmp.ne.s32.totalorder %s891_s19, %s887_s18 }
  0x23   : > { %p1182_p3 = scmp.eq.s32.totalorder %s1015_s29, 0  ;;  %p174_p4 = scmp.eq.s32.totalorder %s1015_s29, 3 }
  0x24   : > { %p180_p5 = scmp.eq.s32.totalorder %s604_s6, 3  ;;  %p605_p9 = scmp.ge.s32.totalorder %s907_s23, 1 }
  0x25   : > { %p1024_p8 = por %p1182_p3, %p82_p2  ;;  %p1032_p10 = por %p174_p4, %p76_p1 }
  0x26   : > { %p1036_p11 = por %p180_p5, %p82_p2  ;;  %p187_p12 = scmp.lt.s32.totalorder %s907_s23, 5 }
  0x27   : > { %s1187_s7 = scalar_select %p1024_p8, 1, 0 }
  0x28   : > { %s1188_s8 = scalar_select %p1032_p10, 1, 0 }
  0x29   : > { %s1189_s9 = scalar_select %p1036_p11, 1, 0 }
  0x2a   : > { %p1041_p13 = pnand %p605_p9, %p187_p12  ;;  %s913_s12 = smov [#allocation3]  }
  0x2b   : > { %s203_s14 = sshll.u32 %s913_s12, 4  ;;  %s610_s15 = sshll.u32 %s903_s22, 4  ;;  %s1051_s14 = int_to_ptr.vmem [resolvable:$true] %s203_s14 }
  0x2c   : > { %p668_p0 = pneg %p1041_p13  ;;  %s251_s25 = scalar_lea.hbm %s1177_s2, %s610_s15 }
  0x2d   : > { %s246_s26 = scalar_lea.vmem [#allocation8], %s222_s28  ;;  %s914_s12 = smov [#allocation8]  }
  0x2e   : > { %s253_s27 = sshll.u32 %s246_s26, 4  ;;  %p1057_p1 = pnand %p668_p0, %p1182_p3  ;;  %s254_s27 = int_to_ptr.vmem [resolvable:$true] %s253_s27 }
  0x2f   : > { %s782_s1 = scalar_lea.vmem %s254_s27, 16  ;;  %s787_s16 = sshll.u32 %s914_s12, 4  ;;  %s788_s16 = int_to_ptr.vmem [resolvable:$false] %s787_s16 }
  0x30   : > { %p783_p2 = scmp.ne.s32.totalorder %s254_s27, %s782_s1  ;;  %s789_s15 = scalar_lea.vmem %s788_s16, 32 }
  0x31   : > { %p790_p9 = scmp.lt.s32.totalorder %s254_s27, %s788_s16  ;;  %p791_p12 = scmp.lt.s32.totalorder %s789_s15, %s782_s1 }
  0x32   : > { %p785_p4 = pnand %p783_p2, %p743_p7 }
  0x33   : > { %p792_p11 = por %p791_p12, %p790_p9 }
  0x34   : > { %p786_p5 = pneg %p785_p4 }
  0x36   : > { %p793_p10 = pnand %p792_p11, %p786_p5 }
  0x38   : > { %796 = shalt.err (!%p793_p10)
}
  0x39   : > { %678 = dma.hbm_to_vmem [thread:$0]  (!%p1000_p6), %s251_s25, 16, %s254_s27, %s1004_s13  }
  0x3a   : > { %p799_p7 = pneg %p1057_p1  ;;  %s808_s28 = scalar_lea.vmem %s1051_s14, 64 }
  0x3b   : > { %p809_p0 = scmp.ne.s32.totalorder %s1051_s14, %s808_s28  ;;  %p816_p3 = scmp.lt.s32.totalorder %s1051_s14, %s1051_s14 }
  0x3c   : > { %p817_p8 = scmp.lt.s32.totalorder %s808_s28, %s808_s28 }
  0x3d   : > { %p811_p2 = pnand %p809_p0, %p799_p7 }
  0x3e   : > { %p818_p9 = por %p817_p8, %p816_p3 }
  0x3f   : > { %p812_p4 = pneg %p811_p2 }
  0x41   : > { %p819_p11 = pnand %p818_p9, %p812_p4 }
  0x43   : > { %822 = shalt.err (!%p819_p11)
}
  0x44   : > { %671 = dma.hbm_to_vmem [thread:$0]  (!%p1057_p1), %s1175_s0, 64, %s1051_s14, [#allocation4]  }
  0x45   : > { %262 = sbr.rel (%p1041_p13) target bundleno = 641 (0x281), region = 40  ;;  %p1192_p6 = scmp.eq.s32.totalorder (!%p1041_p13), %s1015_s29, 0 }
  0x4a   : > { %874 = dma.done.wait (%p1192_p6), [#allocation4], 64   ;;  %p1193_p10 = pmov %p1192_p6 }
  0x4b   : > { %s268_s13 = sand.u32 1, %s1015_s29   ;;  %s1087_s17 = sand.u32 1, %s891_s19  }
  0x4c   : > { %876 = vsyncadd (%p1193_p10), [#allocation4], 4294967232  ;;  %s613_s25 = sshll.u32 %s1087_s17, 8  ;;  %s269_s26 = scalar_lea.sflag [#allocation7], %s268_s13 }
  0x4d   : > { %s1090_s27 = scalar_lea.vmem [#allocation6], %s613_s25  ;;  %p1194_p3 = scmp.ne.s32.totalorder %s1187_s7, 0 }
  0x4f   : > { %878 = dma.done.wait (%p1194_p3), %s269_s26, 4112  }
  0x50   : > { %880 = vsyncadd (%p1194_p3), %s269_s26, 4294963184  ;;  %v358_v0 = vld [vmem:[%s1090_s27 + $0xf8] sm:$0xff]  ;;  %v357_v2 = vld [vmem:[%s1090_s27 + $0xf0] sm:$0xff]  ;;  %s280_s29 = scalar_lea.vmem [#allocation8], %s1087_s17  ;;  %vm446_vm0 = vcmask 1041408   ;;  %s614_s7 = sshll.u32 %s1087_s17, 1 }
  0x51   : > { %v342_v1 = vld [vmem:[%s1090_s27 + $0x78] sm:$0xff]  ;;  %623 = vmatprep.subr.mxu0 %v358_v0  ;;  %v341_v3 = vld [vmem:[%s1090_s27 + $0x70] sm:$0xff]  ;;  %v356_v4 = vld [vmem:[%s1090_s27 + $0xe8] sm:$0xff]  ;;  %s620_s16 = sshll.u32 %s899_s21, 5  ;;  %s310_s15 = scalar_lea.vmem [#allocation9], %s614_s7 }
  0x52   : > { %624 = vmatpush3.msra.mxu0 %v342_v1  ;;  %v340_v5 = vld [vmem:[%s1090_s27 + $0x68] sm:$0xff]  ;;  %v355_v6 = vld [vmem:[%s1090_s27 + $0xe0] sm:$0xff]  ;;  %v354_v8 = vld [vmem:[%s1090_s27 + $0xd8] sm:$0xff]  ;;  %s492_s28 = sshll.u32 %s310_s15, 4  ;;  %s490_s13 = scalar_lea.hbm %s1180_s5, %s620_s16  ;;  %s493_s28 = int_to_ptr.vmem [resolvable:$true] %s492_s28 }
  0x53   : > { %625 = vmatprep.subr.mxu0 %v357_v2  ;;  %v339_v7 = vld [vmem:[%s1090_s27 + $0x60] sm:$0xff]  ;;  %v338_v9 = vld [vmem:[%s1090_s27 + $0x58] sm:$0xff]  ;;  %v353_v10 = vld [vmem:[%s1090_s27 + $0xd0] sm:$0xff]  ;;  %s479_s25 = scalar_lea.sflag [#allocation5], %s1087_s17  ;;  %s823_s26 = scalar_lea.vmem %s493_s28, 32 }
  0x54   : > { %626 = vmatpush3.msra.mxu0 %v341_v3  ;;  %v337_v11 = vld [vmem:[%s1090_s27 + $0x50] sm:$0xff]  ;;  %v352_v12 = vld [vmem:[%s1090_s27 + $0xc8] sm:$0xff]  ;;  %v616_v13 = vld.sshfl [vmem:[#allocation3] sm:$0x33 pattern:$0x76325410]  ;;  %p824_p8 = scmp.ne.s32.totalorder %s493_s28, %s823_s26 }
  0x55   : > { %627 = vmatprep.subr.mxu0 %v356_v4  ;;  %v336_v14 = vld [vmem:[%s1090_s27 + $0x48] sm:$0xff]  ;;  %v367_v15 = vcombine.high %v616_v13, %v616_v13  ;;  %v351_v16 = vld [vmem:[%s1090_s27 + $0xc0] sm:$0xff]  ;;  %v350_v18 = vld [vmem:[%s1090_s27 + $0xb8] sm:$0xff]  ;;  %p1195_p13 = scmp.ne.s32.totalorder %s1188_s8, 0 }
  0x56   : > { %628 = vmatpush3.msra.mxu0 %v340_v5  ;;  %v335_v17 = vld [vmem:[%s1090_s27 + $0x40] sm:$0xff]  ;;  %v334_v19 = vld [vmem:[%s1090_s27 + $0x38] sm:$0xff]  ;;  %v349_v20 = vld [vmem:[%s1090_s27 + $0xb0] sm:$0xff] }
  0x57   : > { %629 = vmatprep.subr.mxu0 %v355_v6  ;;  %434 = vmatprep.mubr.f32.mxu0 %v367_v15  ;;  %v333_v21 = vld [vmem:[%s1090_s27 + $0x30] sm:$0xff]  ;;  %v348_v22 = vld [vmem:[%s1090_s27 + $0xa8] sm:$0xff]  ;;  %v347_v24 = vld [vmem:[%s1090_s27 + $0xa0] sm:$0xff]  ;;  %p825_p1 = pnand %p824_p8, %p1195_p13 }
  0x58   : > { %630 = vmatpush3.msra.mxu0 %v339_v7  ;;  %v332_v23 = vld [vmem:[%s1090_s27 + $0x28] sm:$0xff]  ;;  %v331_v25 = vld [vmem:[%s1090_s27 + $0x20] sm:$0xff]  ;;  %v346_v26 = vld [vmem:[%s1090_s27 + $0x98] sm:$0xff] }
  0x59   : > { %631 = vmatprep.subr.mxu0 %v354_v8  ;;  %v330_v27 = vld [vmem:[%s1090_s27 + $0x18] sm:$0xff]  ;;  %v345_v28 = vld [vmem:[%s1090_s27 + $0x90] sm:$0xff]  ;;  %v344_v30 = vld [vmem:[%s1090_s27 + $0x88] sm:$0xff]  ;;  %p826_p5 = pneg %p825_p1 }
  0x5a   : > { %632 = vmatpush3.msra.mxu0 %v338_v9  ;;  %v329_v29 = vld [vmem:[%s1090_s27 + $0x10] sm:$0xff]  ;;  %v328_v31 = vld [vmem:[%s1090_s27 + $0x8] sm:$0xff]  ;;  %v343_v32 = vld [vmem:[%s1090_s27 + $0x80] sm:$0xff] }
  0x5b   : > { %633 = vmatprep.subr.mxu0 %v353_v10  ;;  %v327_v33 = vld [vmem:[%s1090_s27] sm:$0xff]  ;;  %v615_v34 = vld [vmem:[%s280_s29] ss:$0 sm:$0xff]  ;;  %s915_s27 = smov [#allocation9]  }
  0x5c   : > { %634 = vmatpush3.msra.mxu0 %v337_v11  ;;  %324 = vst [vmem:[#allocation2] sm:$0x3] %v615_v34  ;;  %v617_v51 = vld [vmem:[%s1178_s3] ss:$0 sm:$0xff]  ;;  %s827_s29 = sshll.u32 %s915_s27, 4  ;;  %s828_s29 = int_to_ptr.vmem [resolvable:$false] %s827_s29 }
  0x5d   : > { %635 = vmatprep.subr.mxu0 %v352_v12  ;;  %v618_v53 = vld [vmem:[%s1179_s4] ss:$0 sm:$0xff]  ;;  %s829_s21 = scalar_lea.vmem %s828_s29, 64  ;;  %p830_p12 = scmp.lt.s32.totalorder %s493_s28, %s828_s29 }
  0x5e   : > { %636 = vmatpush3.msra.mxu0 %v336_v14  ;;  %p831_p7 = scmp.lt.s32.totalorder %s829_s21, %s823_s26 }
  0x5f   : > { %637 = vmatprep.subr.mxu0 %v351_v16 }
  0x60   : > { %638 = vmatpush3.msra.mxu0 %v335_v17  ;;  %p832_p0 = por %p831_p7, %p830_p12 }
  0x61   : > { %639 = vmatprep.subr.mxu0 %v350_v18 }
  0x62   : > { %640 = vmatpush3.msra.mxu0 %v334_v19  ;;  %p833_p2 = pnand %p832_p0, %p826_p5 }
  0x63   : > { %641 = vmatprep.subr.mxu0 %v349_v20  ;;  %v325_v36 = vld [vmem:[#allocation2] sm:$0x3] }
  0x64   : > { %642 = vmatpush3.msra.mxu0 %v333_v21 }
  0x65   : > { %643 = vmatprep.subr.mxu0 %v348_v22 }
  0x66   : > { %644 = vmatpush3.msra.mxu0 %v332_v23 }
  0x67   : > { %645 = vmatprep.subr.mxu0 %v347_v24 }
  0x68   : > { %646 = vmatpush3.msra.mxu0 %v331_v25 }
  0x69   : > { %647 = vmatprep.subr.mxu0 %v346_v26 }
  0x6a   : > { %648 = vmatpush3.msra.mxu0 %v330_v27 }
  0x6b   : > { %649 = vmatprep.subr.mxu0 %v345_v28 }
  0x6c   : > { %650 = vmatpush3.msra.mxu0 %v329_v29 }
  0x6d   : > { %651 = vmatprep.subr.mxu0 %v344_v30 }
  0x6e   : > { %652 = vmatpush3.msra.mxu0 %v328_v31 }
  0x6f   : > { %653 = vmatprep.subr.mxu0 %v343_v32 }
  0x70   : > { %654 = vmatpush3.msra.mxu0 %v327_v33 }
  0x71   : > { %435 = vmatmul.mubr.f32.vlgmr.msra.gmra.mxu0 %v616_v13 }
 0x131   : > { %v655_v35 = vpop.f32.mrf.mxu0 }
 0x133   : > { %v656_v37 = vpop.f32.mrf.mxu0 }
 0x134   : > { %v657_v38 = vadd.f32 %v656_v37, %v655_v35 }
 0x136   : > { %v440_v39 = vadd.f32 %v657_v38, %v325_v36 }
 0x138   : > { %441 = vst [vmem:[#allocation2] sm:$0x3] %v440_v39 }
 0x13f   : > { %v445_v40 = vld [vmem:[#allocation2] sm:$0x3] }
 0x140   : > { %v447_v41 = vsel %vm446_vm0, %v445_v40, 0.0 }
 0x141   : > { %448 = vadd.xlane.f32.xlu0 %v447_v41 }
 0x1ca   : > { %v449_v42 = vpop.xlane.xlu0 %448 }
 0x1cb   : > { %v451_v43 = vmul.f32 0.0078125, %v449_v42 }
 0x1cd   : > { %v452_v44 = vsub.f32 %v445_v40, %v451_v43 }
 0x1cf   : > { %v453_v45 = vmul.f32 %v452_v44, %v452_v44 }
 0x1d1   : > { %v454_v46 = vsel %vm446_vm0, %v453_v45, 0.0 }
 0x1d2   : > { %455 = vadd.xlane.f32.xlu0 %v454_v46 }
 0x25b   : > { %v456_v47 = vpop.xlane.xlu0 %455 }
 0x25c   : > { %v457_v48 = vmul.f32 0.0078125, %v456_v47 }
 0x25e   : > { %v458_v49 = vadd.f32 1e-05, %v457_v48 }
 0x260   : > { %739 = vrsqrt.f32 %v458_v49 }
 0x26d   : > { %v740_v50 = vpop.eup %739 }
 0x26e   : > { %v460_v52 = vmul.f32 %v740_v50, %v452_v44 }
 0x270   : > { %v468_v54 = vmul.f32 %v617_v51, %v460_v52 }
 0x272   : > { %v476_v55 = vadd.f32 %v618_v53, %v468_v54 }
 0x274   : > { %477 = vst [vmem:[%s310_s15] sm:$0x3] %v476_v55 }
 0x275   : > { %836 = shalt.err (!%p833_p2)
}
 0x276   : > { %s837_s7 = scalar_lea.hbm %s490_s13, 32  ;;  %s841_s14 = scalar_lea.hbm %s1180_s5, 128 }
 0x277   : > { %p838_p4 = scmp.ne.s32.totalorder %s490_s13, %s837_s7  ;;  %p842_p6 = scmp.lt.s32.totalorder %s490_s13, %s1180_s5 }
 0x278   : > { %p843_p10 = scmp.lt.s32.totalorder %s841_s14, %s837_s7 }
 0x279   : > { %p839_p9 = pnand %p838_p4, %p1195_p13 }
 0x27a   : > { %p844_p3 = por %p843_p10, %p842_p6 }
 0x27b   : > { %p840_p11 = pneg %p839_p9 }
 0x27d   : > { %p845_p8 = pnand %p844_p3, %p840_p11 }
 0x27f   : > { %848 = shalt.err (!%p845_p8)
}
 0x280   : > { %666 = dma.vmem_to_hbm [thread:$0]  (%p1195_p13), %s493_s28, 32, %s490_s13, %s479_s25  }
 0x281 PF: > { %p686_p1 = scmp.ge.s32.totalorder %s907_s23, 2  ;;  %s504_s16 = sand.u32 1, %s887_s18  }
 0x282   : > { %p1196_p5 = scmp.ne.s32.totalorder %s1189_s9, 0  ;;  %s505_s15 = scalar_lea.sflag [#allocation5], %s504_s16 }
 0x284   : > { %p680_p12 = pnand %p686_p1, %p1196_p5 }
 0x286   : > { %p681_p7 = pneg %p680_p12 }
 0x288   : > { %882 = dma.done.wait (%p681_p7), %s505_s15, 32  }
 0x289   : > { %884 = vsyncadd (%p681_p7), %s505_s15, 4294967264  ;;  %s22_s23 = sadd.s32 1, %s907_s23   ;;  %s1197_s18 = smov %s891_s19 }
 0x28a   : > { %p19_p0 = scmp.ge.s32.totalorder %s22_s23, 6   ;;  %s1198_s19 = smov %s895_s20 }
 0x28b   : > { %s1199_s20 = smov %s993_s30  ;;  %s1200_s21 = smov %s903_s22 }
 0x28c   : > { %s1201_s22 = smov %s1203_s24  ;;  %21 = sbr.rel (!%p19_p0) target bundleno = 9 (0x9), region = 110 }
 0x291   :  { %510 = vsyncpa [#allocation4], 1 }
 0x292   :  { %512 = vsyncpa [#allocation4 + $0x1], 1 }
 0x293   :  { %513 = vsyncpa [#allocation7], 1 }
 0x294   :  { %515 = vsyncpa [#allocation7 + $0x1], 1 }
 0x295   :  { %516 = vsyncpa [#allocation5], 1 }
 0x296   :  { %518 = vsyncpa [#allocation5 + $0x1], 1 }

</bundles_post_ra>
